<compile_context>
chip_gen: v7x
topology: tpu7x:2x2x1
jax: 0.10.0
libtpu: 0.0.40
codegen_flags: <defaults>
</compile_context>

<pallas_src>
import jax
import jax.numpy as jnp
from jax.experimental import pallas as pl
from jax.experimental.pallas import tpu as pltpu


MXU_DTYPE = jnp.bfloat16   # matmul operand dtype (accumulation stays f32)
LANE = 128                 # lane width (feature padding target)
SUBLANE = 8


def _round_up(n, m):
    return ((n + m - 1) // m) * m


def _vmem_limit_bytes(default=32 * 1024 * 1024):
    """Generation-aware VMEM limit (v5e/v6e: 128 MiB, v7x: 64 MiB) with headroom."""
    try:
        info = pltpu.get_tpu_info()
        cap = getattr(info, "vmem_capacity_bytes", None)
        if cap:
            return int(cap) * 7 // 8
    except Exception:
        pass
    return default


# ---------------------------------------------------------------------------
# Fused kernel: whole Bayesian MLP in one pallas_call
# ---------------------------------------------------------------------------
def _make_fused_kernel(n_layers):
    """Refs: std(SMEM), x, [Wm_t(bf16), Zw_t(bf16), bm, zb]*L, out, [A_scr, b_scr]*L."""

    def kernel(std_ref, x_ref, *rest):
        layer_in = rest[:4 * n_layers]
        o_ref = rest[4 * n_layers]
        scratch = rest[4 * n_layers + 1:]

        # Stage reparameterised weights once (grid axis is "arbitrary" => sequential,
        # single core, so program_id(0)==0 runs exactly once before any other tile).
        @pl.when(pl.program_id(0) == 0)
        def _stage_weights():
            for j in range(n_layers):
                wm_ref, zw_ref, bm_ref, zb_ref = layer_in[4 * j: 4 * j + 4]
                a_scr, b_scr = scratch[2 * j], scratch[2 * j + 1]
                w_std = std_ref[2 * j]          # SMEM scalar model_std (per-tensor)
                b_std = std_ref[2 * j + 1]
                # Reparameterise in f32 on the VPU (v5e has no bf16 VPU), store bf16.
                a_f32 = (wm_ref[...].astype(jnp.float32)
                         + w_std * zw_ref[...].astype(jnp.float32))
                a_scr[...] = a_f32.astype(MXU_DTYPE)
                b_scr[...] = bm_ref[...] + b_std * zb_ref[...]

        # MLP chain: bf16 MXU matmuls with f32 accumulation; bias/ReLU in f32.
        h = x_ref[...].astype(MXU_DTYPE)                    # (tm, in_pad)
        for j in range(n_layers):
            a_scr, b_scr = scratch[2 * j], scratch[2 * j + 1]
            h = jnp.dot(h, a_scr[...],
                        preferred_element_type=jnp.float32) + b_scr[...]
            if j < n_layers - 1:                            # fused nn.ReLU
                h = jnp.maximum(h, 0.0).astype(MXU_DTYPE)
        o_ref[...] = h.astype(o_ref.dtype)                  # lane-dense store

    return kernel


# ---------------------------------------------------------------------------
# Parameter preparation: transpose + zero-pad + bf16 weight storage (one-time)
# ---------------------------------------------------------------------------
def prepare_bnn_params(mean_params, std_scalars, z_params, lane_pad=LANE):
    """mean_params[j] = (W_mean (out,in), b_mean (out,))   [nn.Linear layout]
       std_scalars[j] = (w_std, b_std) per-tensor constant model_std
       z_params[j]    = (Z_w (out,in), Z_b (out,)) realized N(0,1) draws."""
    layers, std_list = [], []
    for (wm, bm), (ws, bs), (zw, zb) in zip(mean_params, std_scalars, z_params):
        # Fail loudly if model_std has become per-element (scalar-SMEM path only).
        assert jnp.ndim(jnp.asarray(ws)) == 0 and jnp.ndim(jnp.asarray(bs)) == 0, \
            "per-element model_std not supported by the scalar-SMEM fast path"
        fout, fin = wm.shape
        fin_p, fout_p = _round_up(fin, lane_pad), _round_up(fout, lane_pad)
        wm_t = jnp.zeros((fin_p, fout_p), MXU_DTYPE).at[:fin, :fout].set(
            wm.T.astype(MXU_DTYPE))
        zw_t = jnp.zeros((fin_p, fout_p), MXU_DTYPE).at[:fin, :fout].set(
            zw.T.astype(MXU_DTYPE))
        bm_p = jnp.zeros((1, fout_p), jnp.float32).at[0, :fout].set(bm)
        zb_p = jnp.zeros((1, fout_p), jnp.float32).at[0, :fout].set(zb)
        layers.append((wm_t, zw_t, bm_p, zb_p))
        std_list += [float(ws), float(bs)]
    std_vec = jnp.asarray(std_list, jnp.float32)            # SMEM scalars
    return std_vec, layers


# ---------------------------------------------------------------------------
# Wrapper: one pallas_call for the whole forward pass
# ---------------------------------------------------------------------------
def bnn_forward(x, std_vec, layers, out_features, *, tm=None):
    batch, fin = x.shape
    n_layers = len(layers)
    fin_p = layers[0][0].shape[0]
    fout_p = layers[-1][0].shape[1]

    # Batch tile: collapse to a single grid step when the whole batch fits
    # comfortably; otherwise 256-row tiles (multiple of 16 for bf16 LHS packing).
    if tm is None:
        b16 = _round_up(batch, 16)
        tm = b16 if b16 <= 512 else 256
    assert tm % 16 == 0
    b_pad = _round_up(batch, tm)

    if (b_pad, fin_p) != (batch, fin):
        x_in = jnp.zeros((b_pad, fin_p), jnp.float32).at[:batch, :fin].set(x)
    else:
        x_in = x.astype(jnp.float32)

    in_specs = [pl.BlockSpec(memory_space=pltpu.MemorySpace.SMEM),   # std scalars
                pl.BlockSpec((tm, fin_p), lambda i: (i, 0))]         # x tile
    operands = [std_vec, x_in]
    scratch_shapes = []
    flops = 0
    bytes_accessed = x_in.size * 4 + b_pad * fout_p * 4
    for (wm_t, zw_t, bm_p, zb_p) in layers:
        fi, fo = wm_t.shape
        in_specs += [pl.BlockSpec((fi, fo), lambda i: (0, 0)),       # W_mean.T bf16
                     pl.BlockSpec((fi, fo), lambda i: (0, 0)),       # Z_w.T   bf16
                     pl.BlockSpec((1, fo), lambda i: (0, 0)),        # b_mean  f32
                     pl.BlockSpec((1, fo), lambda i: (0, 0))]        # Z_b     f32
        operands += [wm_t, zw_t, bm_p, zb_p]
        scratch_shapes += [pltpu.VMEM((fi, fo), MXU_DTYPE),          # staged A bf16
                           pltpu.VMEM((1, fo), jnp.float32)]         # staged b f32
        flops += 2 * b_pad * fi * fo
        bytes_accessed += 2 * fi * fo * 2 + 2 * fo * 4

    out = pl.pallas_call(
        _make_fused_kernel(n_layers),
        out_shape=jax.ShapeDtypeStruct((b_pad, fout_p), jnp.float32),
        grid_spec=pltpu.PrefetchScalarGridSpec(
            num_scalar_prefetch=0,
            grid=(b_pad // tm,),
            in_specs=in_specs,
            out_specs=pl.BlockSpec((tm, fout_p), lambda i: (i, 0)),
            scratch_shapes=scratch_shapes,
        ),
        compiler_params=pltpu.CompilerParams(
            # "arbitrary": sequential single-core iteration -> pid==0 weight staging
            # is valid and weight DMA is not duplicated across v7x TensorCores.
            dimension_semantics=("arbitrary",),
            vmem_limit_bytes=_vmem_limit_bytes(),
        ),
        cost_estimate=pl.CostEstimate(flops=flops, transcendentals=0,
                                      bytes_accessed=bytes_accessed),
    )(*operands)

    if (b_pad, fout_p) != (batch, out_features):
        out = out[:batch, :out_features]
    return out


# ---------------------------------------------------------------------------
# Pure-JAX references (module semantics); match_kernel mirrors kernel precision
# ---------------------------------------------------------------------------
def bnn_forward_ref(x, mean_params, std_scalars, z_params, match_kernel=False):
    n = len(mean_params)
    h = x.astype(jnp.float32)
    for j in range(n):
        wm, bm = mean_params[j]
        ws, bs = std_scalars[j]
        zw, zb = z_params[j]
        if match_kernel:
            a = (wm.astype(MXU_DTYPE).astype(jnp.float32)
                 + ws * zw.astype(MXU_DTYPE).astype(jnp.float32)).astype(MXU_DTYPE)
            b = bm + bs * zb
            h = jnp.dot(h.astype(MXU_DTYPE), a.T,
                        preferred_element_type=jnp.float32) + b
        else:
            a = wm + ws * zw
            b = bm + bs * zb
            h = h @ a.T + b
        if j < n - 1:
            h = jnp.maximum(h, 0.0)
    return h


if __name__ == "__main__":
    key = jax.random.PRNGKey(0)

    # Linear(16->32), ReLU, Linear(32->32), ReLU, Linear(32->4)
    batch, in_features, hidden, out_features = 16, 16, 32, 4
    layer_dims = [(in_features, hidden), (hidden, hidden), (hidden, out_features)]

    key, kx = jax.random.split(key)
    x = jax.random.normal(kx, (batch, in_features), jnp.float32)

    mean_params, std_scalars, z_params = [], [], []
    for (fin, fout) in layer_dims:
        key, k1, k2, k3, k4 = jax.random.split(key, 5)
        wm = 0.1 * jax.random.normal(k1, (fout, fin), jnp.float32)   # model_mean
        bm = 0.1 * jax.random.normal(k2, (fout,), jnp.float32)
        std_scalars.append((0.05, 0.05))  # model_std = get_std(p)*ones_like(p) init
        zw = jax.random.normal(k3, (fout, fin), jnp.float32)         # realized N(0,1)
        zb = jax.random.normal(k4, (fout,), jnp.float32)
        mean_params.append((wm, bm))
        z_params.append((zw, zb))

    std_vec, layers = prepare_bnn_params(mean_params, std_scalars, z_params)

    y = bnn_forward(x, std_vec, layers, out_features)
    y = jax.block_until_ready(y)
    assert y.shape == (batch, out_features)

    # Tight check vs a reference with the same precision model
    # (bf16 weight storage + MXU operands, f32 reparam / accumulation / bias / ReLU).
    y_matched = bnn_forward_ref(x, mean_params, std_scalars, z_params,
                                match_kernel=True)
    assert jnp.allclose(y, y_matched, atol=2e-3, rtol=2e-3), \
        "mismatch vs matched-precision reference"

    # Module-fidelity check vs the full-f32 PyTorch-equivalent forward.
    y_f32 = bnn_forward_ref(x, mean_params, std_scalars, z_params,
                            match_kernel=False)
    assert jnp.allclose(y, y_f32, atol=5e-2), "mismatch vs f32 module reference"

    print("KERNEL_OK")
</pallas_src>

<mosaic_0001>
module attributes {stable_mosaic.version = 11 : i64} {
  func.func @kernel(%arg0: i32, %arg1: memref<6xf32, #tpu.memory_space<smem>>, %arg2: memref<16x128xf32, #tpu.memory_space<vmem>>, %arg3: memref<128x128xbf16, #tpu.memory_space<vmem>>, %arg4: memref<128x128xbf16, #tpu.memory_space<vmem>>, %arg5: memref<1x128xf32, #tpu.memory_space<vmem>>, %arg6: memref<1x128xf32, #tpu.memory_space<vmem>>, %arg7: memref<128x128xbf16, #tpu.memory_space<vmem>>, %arg8: memref<128x128xbf16, #tpu.memory_space<vmem>>, %arg9: memref<1x128xf32, #tpu.memory_space<vmem>>, %arg10: memref<1x128xf32, #tpu.memory_space<vmem>>, %arg11: memref<128x128xbf16, #tpu.memory_space<vmem>>, %arg12: memref<128x128xbf16, #tpu.memory_space<vmem>>, %arg13: memref<1x128xf32, #tpu.memory_space<vmem>>, %arg14: memref<1x128xf32, #tpu.memory_space<vmem>>, %arg15: memref<16x128xf32, #tpu.memory_space<vmem>>, %arg16: memref<128x128xbf16, #tpu.memory_space<vmem>>, %arg17: memref<1x128xf32, #tpu.memory_space<vmem>>, %arg18: memref<128x128xbf16, #tpu.memory_space<vmem>>, %arg19: memref<1x128xf32, #tpu.memory_space<vmem>>, %arg20: memref<128x128xbf16, #tpu.memory_space<vmem>>, %arg21: memref<1x128xf32, #tpu.memory_space<vmem>>) attributes {dimension_semantics = [#tpu.dimension_semantics<arbitrary>], iteration_bounds = array<i64: 1>, scalar_prefetch = 0 : i64, scratch_operands = 6 : i64, tpu.core_type = #tpu.core_type<tc>, window_params = [{transform_indices = @transform_0, window_bounds = array<i64: 6>}, {transform_indices = @transform_1, window_bounds = array<i64: 16, 128>}, {pipeline_mode = #tpu.pipeline_mode<synchronous>, transform_indices = @transform_2, window_bounds = array<i64: 128, 128>}, {pipeline_mode = #tpu.pipeline_mode<synchronous>, transform_indices = @transform_3, window_bounds = array<i64: 128, 128>}, {pipeline_mode = #tpu.pipeline_mode<synchronous>, transform_indices = @transform_4, window_bounds = array<i64: 1, 128>}, {pipeline_mode = #tpu.pipeline_mode<synchronous>, transform_indices = @transform_5, window_bounds = array<i64: 1, 128>}, {pipeline_mode = #tpu.pipeline_mode<synchronous>, transform_indices = @transform_6, window_bounds = array<i64: 128, 128>}, {pipeline_mode = #tpu.pipeline_mode<synchronous>, transform_indices = @transform_7, window_bounds = array<i64: 128, 128>}, {pipeline_mode = #tpu.pipeline_mode<synchronous>, transform_indices = @transform_8, window_bounds = array<i64: 1, 128>}, {pipeline_mode = #tpu.pipeline_mode<synchronous>, transform_indices = @transform_9, window_bounds = array<i64: 1, 128>}, {pipeline_mode = #tpu.pipeline_mode<synchronous>, transform_indices = @transform_10, window_bounds = array<i64: 128, 128>}, {pipeline_mode = #tpu.pipeline_mode<synchronous>, transform_indices = @transform_11, window_bounds = array<i64: 128, 128>}, {pipeline_mode = #tpu.pipeline_mode<synchronous>, transform_indices = @transform_12, window_bounds = array<i64: 1, 128>}, {pipeline_mode = #tpu.pipeline_mode<synchronous>, transform_indices = @transform_13, window_bounds = array<i64: 1, 128>}, {transform_indices = @transform_14, window_bounds = array<i64: 16, 128>}]} {
    %c0_i32 = arith.constant 0 : i32
    %0 = arith.cmpi eq, %arg0, %c0_i32 : i32
    %1 = arith.extui %0 : i1 to i32
    %c0_i32_0 = arith.constant 0 : i32
    %2 = arith.cmpi ne, %1, %c0_i32_0 : i32
    scf.if %2 {
      %c0_20 = arith.constant 0 : index
      %27 = memref.load %arg1[%c0_20] : memref<6xf32, #tpu.memory_space<smem>>
      %c1 = arith.constant 1 : index
      %28 = memref.load %arg1[%c1] : memref<6xf32, #tpu.memory_space<smem>>
      %c0_21 = arith.constant 0 : index
      %c0_22 = arith.constant 0 : index
      %29 = vector.load %arg3[%c0_21, %c0_22] : memref<128x128xbf16, #tpu.memory_space<vmem>>, vector<128x128xbf16>
      %30 = arith.extf %29 : vector<128x128xbf16> to vector<128x128xf32>
      %c0_23 = arith.constant 0 : index
      %c0_24 = arith.constant 0 : index
      %31 = vector.load %arg4[%c0_23, %c0_24] : memref<128x128xbf16, #tpu.memory_space<vmem>>, vector<128x128xbf16>
      %32 = arith.extf %31 : vector<128x128xbf16> to vector<128x128xf32>
      %33 = vector.broadcast %27 : f32 to vector<128x128xf32>
      %34 = arith.mulf %33, %32 : vector<128x128xf32>
      %35 = arith.addf %30, %34 : vector<128x128xf32>
      %36 = arith.truncf %35 : vector<128x128xf32> to vector<128x128xbf16>
      %c0_25 = arith.constant 0 : index
      %c0_26 = arith.constant 0 : index
      %37 = vector.load %arg16[%c0_25, %c0_26] : memref<128x128xbf16, #tpu.memory_space<vmem>>, vector<128x128xbf16>
      tpu.vector_store %arg16[%c0_25, %c0_26], %36 {strides = array<i32>} : memref<128x128xbf16, #tpu.memory_space<vmem>>, vector<128x128xbf16>,
      %c0_27 = arith.constant 0 : index
      %c0_28 = arith.constant 0 : index
      %38 = vector.load %arg5[%c0_27, %c0_28] : memref<1x128xf32, #tpu.memory_space<vmem>>, vector<1x128xf32>
      %c0_29 = arith.constant 0 : index
      %c0_30 = arith.constant 0 : index
      %39 = vector.load %arg6[%c0_29, %c0_30] : memref<1x128xf32, #tpu.memory_space<vmem>>, vector<1x128xf32>
      %40 = vector.broadcast %28 : f32 to vector<1x128xf32>
      %41 = arith.mulf %40, %39 : vector<1x128xf32>
      %42 = arith.addf %38, %41 : vector<1x128xf32>
      %c0_31 = arith.constant 0 : index
      %c0_32 = arith.constant 0 : index
      %43 = vector.load %arg17[%c0_31, %c0_32] : memref<1x128xf32, #tpu.memory_space<vmem>>, vector<1x128xf32>
      tpu.vector_store %arg17[%c0_31, %c0_32], %42 {strides = array<i32>} : memref<1x128xf32, #tpu.memory_space<vmem>>, vector<1x128xf32>,
      %c2 = arith.constant 2 : index
      %44 = memref.load %arg1[%c2] : memref<6xf32, #tpu.memory_space<smem>>
      %c3 = arith.constant 3 : index
      %45 = memref.load %arg1[%c3] : memref<6xf32, #tpu.memory_space<smem>>
      %c0_33 = arith.constant 0 : index
      %c0_34 = arith.constant 0 : index
      %46 = vector.load %arg7[%c0_33, %c0_34] : memref<128x128xbf16, #tpu.memory_space<vmem>>, vector<128x128xbf16>
      %47 = arith.extf %46 : vector<128x128xbf16> to vector<128x128xf32>
      %c0_35 = arith.constant 0 : index
      %c0_36 = arith.constant 0 : index
      %48 = vector.load %arg8[%c0_35, %c0_36] : memref<128x128xbf16, #tpu.memory_space<vmem>>, vector<128x128xbf16>
      %49 = arith.extf %48 : vector<128x128xbf16> to vector<128x128xf32>
      %50 = vector.broadcast %44 : f32 to vector<128x128xf32>
      %51 = arith.mulf %50, %49 : vector<128x128xf32>
      %52 = arith.addf %47, %51 : vector<128x128xf32>
      %53 = arith.truncf %52 : vector<128x128xf32> to vector<128x128xbf16>
      %c0_37 = arith.constant 0 : index
      %c0_38 = arith.constant 0 : index
      %54 = vector.load %arg18[%c0_37, %c0_38] : memref<128x128xbf16, #tpu.memory_space<vmem>>, vector<128x128xbf16>
      tpu.vector_store %arg18[%c0_37, %c0_38], %53 {strides = array<i32>} : memref<128x128xbf16, #tpu.memory_space<vmem>>, vector<128x128xbf16>,
      %c0_39 = arith.constant 0 : index
      %c0_40 = arith.constant 0 : index
      %55 = vector.load %arg9[%c0_39, %c0_40] : memref<1x128xf32, #tpu.memory_space<vmem>>, vector<1x128xf32>
      %c0_41 = arith.constant 0 : index
      %c0_42 = arith.constant 0 : index
      %56 = vector.load %arg10[%c0_41, %c0_42] : memref<1x128xf32, #tpu.memory_space<vmem>>, vector<1x128xf32>
      %57 = vector.broadcast %45 : f32 to vector<1x128xf32>
      %58 = arith.mulf %57, %56 : vector<1x128xf32>
      %59 = arith.addf %55, %58 : vector<1x128xf32>
      %c0_43 = arith.constant 0 : index
      %c0_44 = arith.constant 0 : index
      %60 = vector.load %arg19[%c0_43, %c0_44] : memref<1x128xf32, #tpu.memory_space<vmem>>, vector<1x128xf32>
      tpu.vector_store %arg19[%c0_43, %c0_44], %59 {strides = array<i32>} : memref<1x128xf32, #tpu.memory_space<vmem>>, vector<1x128xf32>,
      %c4 = arith.constant 4 : index
      %61 = memref.load %arg1[%c4] : memref<6xf32, #tpu.memory_space<smem>>
      %c5 = arith.constant 5 : index
      %62 = memref.load %arg1[%c5] : memref<6xf32, #tpu.memory_space<smem>>
      %c0_45 = arith.constant 0 : index
      %c0_46 = arith.constant 0 : index
      %63 = vector.load %arg11[%c0_45, %c0_46] : memref<128x128xbf16, #tpu.memory_space<vmem>>, vector<128x128xbf16>
      %64 = arith.extf %63 : vector<128x128xbf16> to vector<128x128xf32>
      %c0_47 = arith.constant 0 : index
      %c0_48 = arith.constant 0 : index
      %65 = vector.load %arg12[%c0_47, %c0_48] : memref<128x128xbf16, #tpu.memory_space<vmem>>, vector<128x128xbf16>
      %66 = arith.extf %65 : vector<128x128xbf16> to vector<128x128xf32>
      %67 = vector.broadcast %61 : f32 to vector<128x128xf32>
      %68 = arith.mulf %67, %66 : vector<128x128xf32>
      %69 = arith.addf %64, %68 : vector<128x128xf32>
      %70 = arith.truncf %69 : vector<128x128xf32> to vector<128x128xbf16>
      %c0_49 = arith.constant 0 : index
      %c0_50 = arith.constant 0 : index
      %71 = vector.load %arg20[%c0_49, %c0_50] : memref<128x128xbf16, #tpu.memory_space<vmem>>, vector<128x128xbf16>
      tpu.vector_store %arg20[%c0_49, %c0_50], %70 {strides = array<i32>} : memref<128x128xbf16, #tpu.memory_space<vmem>>, vector<128x128xbf16>,
      %c0_51 = arith.constant 0 : index
      %c0_52 = arith.constant 0 : index
      %72 = vector.load %arg13[%c0_51, %c0_52] : memref<1x128xf32, #tpu.memory_space<vmem>>, vector<1x128xf32>
      %c0_53 = arith.constant 0 : index
      %c0_54 = arith.constant 0 : index
      %73 = vector.load %arg14[%c0_53, %c0_54] : memref<1x128xf32, #tpu.memory_space<vmem>>, vector<1x128xf32>
      %74 = vector.broadcast %62 : f32 to vector<1x128xf32>
      %75 = arith.mulf %74, %73 : vector<1x128xf32>
      %76 = arith.addf %72, %75 : vector<1x128xf32>
      %c0_55 = arith.constant 0 : index
      %c0_56 = arith.constant 0 : index
      %77 = vector.load %arg21[%c0_55, %c0_56] : memref<1x128xf32, #tpu.memory_space<vmem>>, vector<1x128xf32>
      tpu.vector_store %arg21[%c0_55, %c0_56], %76 {strides = array<i32>} : memref<1x128xf32, #tpu.memory_space<vmem>>, vector<1x128xf32>,
    } else {
    }
    %c0 = arith.constant 0 : index
    %c0_1 = arith.constant 0 : index
    %3 = vector.load %arg2[%c0, %c0_1] : memref<16x128xf32, #tpu.memory_space<vmem>>, vector<16x128xf32>
    %4 = arith.truncf %3 : vector<16x128xf32> to vector<16x128xbf16>
    %c0_2 = arith.constant 0 : index
    %c0_3 = arith.constant 0 : index
    %5 = vector.load %arg16[%c0_2, %c0_3] : memref<128x128xbf16, #tpu.memory_space<vmem>>, vector<128x128xbf16>
    %cst = arith.constant dense<0.000000e+00> : vector<16x128xf32>
    %6 = tpu.matmul %4, %5, %cst {dimension_numbers = #tpu.dot_dimension_numbers<[1], [0], [0], [1], [0, 0, 1, 1], [], []>} : vector<16x128xbf16>, vector<128x128xbf16>, vector<16x128xf32> -> vector<16x128xf32>
    %c0_4 = arith.constant 0 : index
    %c0_5 = arith.constant 0 : index
    %7 = vector.load %arg17[%c0_4, %c0_5] : memref<1x128xf32, #tpu.memory_space<vmem>>, vector<1x128xf32>
    %8 = vector.broadcast %7 : vector<1x128xf32> to vector<16x128xf32>
    %9 = arith.addf %6, %8 : vector<16x128xf32>
    %cst_6 = arith.constant 0.000000e+00 : f32
    %10 = vector.broadcast %cst_6 : f32 to vector<16x128xf32>
    %11 = arith.maximumf %9, %10 : vector<16x128xf32>
    %12 = arith.truncf %11 : vector<16x128xf32> to vector<16x128xbf16>
    %c0_7 = arith.constant 0 : index
    %c0_8 = arith.constant 0 : index
    %13 = vector.load %arg18[%c0_7, %c0_8] : memref<128x128xbf16, #tpu.memory_space<vmem>>, vector<128x128xbf16>
    %cst_9 = arith.constant dense<0.000000e+00> : vector<16x128xf32>
    %14 = tpu.matmul %12, %13, %cst_9 {dimension_numbers = #tpu.dot_dimension_numbers<[1], [0], [0], [1], [0, 0, 1, 1], [], []>} : vector<16x128xbf16>, vector<128x128xbf16>, vector<16x128xf32> -> vector<16x128xf32>
    %c0_10 = arith.constant 0 : index
    %c0_11 = arith.constant 0 : index
    %15 = vector.load %arg19[%c0_10, %c0_11] : memref<1x128xf32, #tpu.memory_space<vmem>>, vector<1x128xf32>
    %16 = vector.broadcast %15 : vector<1x128xf32> to vector<16x128xf32>
    %17 = arith.addf %14, %16 : vector<16x128xf32>
    %cst_12 = arith.constant 0.000000e+00 : f32
    %18 = vector.broadcast %cst_12 : f32 to vector<16x128xf32>
    %19 = arith.maximumf %17, %18 : vector<16x128xf32>
    %20 = arith.truncf %19 : vector<16x128xf32> to vector<16x128xbf16>
    %c0_13 = arith.constant 0 : index
    %c0_14 = arith.constant 0 : index
    %21 = vector.load %arg20[%c0_13, %c0_14] : memref<128x128xbf16, #tpu.memory_space<vmem>>, vector<128x128xbf16>
    %cst_15 = arith.constant dense<0.000000e+00> : vector<16x128xf32>
    %22 = tpu.matmul %20, %21, %cst_15 {dimension_numbers = #tpu.dot_dimension_numbers<[1], [0], [0], [1], [0, 0, 1, 1], [], []>} : vector<16x128xbf16>, vector<128x128xbf16>, vector<16x128xf32> -> vector<16x128xf32>
    %c0_16 = arith.constant 0 : index
    %c0_17 = arith.constant 0 : index
    %23 = vector.load %arg21[%c0_16, %c0_17] : memref<1x128xf32, #tpu.memory_space<vmem>>, vector<1x128xf32>
    %24 = vector.broadcast %23 : vector<1x128xf32> to vector<16x128xf32>
    %25 = arith.addf %22, %24 : vector<16x128xf32>
    %c0_18 = arith.constant 0 : index
    %c0_19 = arith.constant 0 : index
    %26 = vector.load %arg15[%c0_18, %c0_19] : memref<16x128xf32, #tpu.memory_space<vmem>>, vector<16x128xf32>
    tpu.vector_store %arg15[%c0_18, %c0_19], %25 {strides = array<i32>} : memref<16x128xf32, #tpu.memory_space<vmem>>, vector<16x128xf32>,
    return
  }
  func.func @transform_0(%arg0: i32) -> i32 {
    %c0_i32 = arith.constant 0 : i32
    %c0_i32_0 = arith.constant 0 : i32
    return %c0_i32 : i32
  }
  func.func @transform_1(%arg0: i32) -> (i32, i32) {
    %c0_i32 = arith.constant 0 : i32
    %c0_i32_0 = arith.constant 0 : i32
    return %arg0, %c0_i32 : i32, i32
  }
  func.func @transform_2(%arg0: i32) -> (i32, i32) {
    %c0_i32 = arith.constant 0 : i32
    %c0_i32_0 = arith.constant 0 : i32
    %c0_i32_1 = arith.constant 0 : i32
    return %c0_i32, %c0_i32_0 : i32, i32
  }
  func.func @transform_3(%arg0: i32) -> (i32, i32) {
    %c0_i32 = arith.constant 0 : i32
    %c0_i32_0 = arith.constant 0 : i32
    %c0_i32_1 = arith.constant 0 : i32
    return %c0_i32, %c0_i32_0 : i32, i32
  }
  func.func @transform_4(%arg0: i32) -> (i32, i32) {
    %c0_i32 = arith.constant 0 : i32
    %c0_i32_0 = arith.constant 0 : i32
    %c0_i32_1 = arith.constant 0 : i32
    return %c0_i32, %c0_i32_0 : i32, i32
  }
  func.func @transform_5(%arg0: i32) -> (i32, i32) {
    %c0_i32 = arith.constant 0 : i32
    %c0_i32_0 = arith.constant 0 : i32
    %c0_i32_1 = arith.constant 0 : i32
    return %c0_i32, %c0_i32_0 : i32, i32
  }
  func.func @transform_6(%arg0: i32) -> (i32, i32) {
    %c0_i32 = arith.constant 0 : i32
    %c0_i32_0 = arith.constant 0 : i32
    %c0_i32_1 = arith.constant 0 : i32
    return %c0_i32, %c0_i32_0 : i32, i32
  }
  func.func @transform_7(%arg0: i32) -> (i32, i32) {
    %c0_i32 = arith.constant 0 : i32
    %c0_i32_0 = arith.constant 0 : i32
    %c0_i32_1 = arith.constant 0 : i32
    return %c0_i32, %c0_i32_0 : i32, i32
  }
  func.func @transform_8(%arg0: i32) -> (i32, i32) {
    %c0_i32 = arith.constant 0 : i32
    %c0_i32_0 = arith.constant 0 : i32
    %c0_i32_1 = arith.constant 0 : i32
    return %c0_i32, %c0_i32_0 : i32, i32
  }
  func.func @transform_9(%arg0: i32) -> (i32, i32) {
    %c0_i32 = arith.constant 0 : i32
    %c0_i32_0 = arith.constant 0 : i32
    %c0_i32_1 = arith.constant 0 : i32
    return %c0_i32, %c0_i32_0 : i32, i32
  }
  func.func @transform_10(%arg0: i32) -> (i32, i32) {
    %c0_i32 = arith.constant 0 : i32
    %c0_i32_0 = arith.constant 0 : i32
    %c0_i32_1 = arith.constant 0 : i32
    return %c0_i32, %c0_i32_0 : i32, i32
  }
  func.func @transform_11(%arg0: i32) -> (i32, i32) {
    %c0_i32 = arith.constant 0 : i32
    %c0_i32_0 = arith.constant 0 : i32
    %c0_i32_1 = arith.constant 0 : i32
    return %c0_i32, %c0_i32_0 : i32, i32
  }
  func.func @transform_12(%arg0: i32) -> (i32, i32) {
    %c0_i32 = arith.constant 0 : i32
    %c0_i32_0 = arith.constant 0 : i32
    %c0_i32_1 = arith.constant 0 : i32
    return %c0_i32, %c0_i32_0 : i32, i32
  }
  func.func @transform_13(%arg0: i32) -> (i32, i32) {
    %c0_i32 = arith.constant 0 : i32
    %c0_i32_0 = arith.constant 0 : i32
    %c0_i32_1 = arith.constant 0 : i32
    return %c0_i32, %c0_i32_0 : i32, i32
  }
  func.func @transform_14(%arg0: i32) -> (i32, i32) {
    %c0_i32 = arith.constant 0 : i32
    %c0_i32_0 = arith.constant 0 : i32
    return %arg0, %c0_i32 : i32, i32
  }
}

</mosaic_0001>

<bundles_post_ra>
// kernel: tpu_custom_call.1
= control target key start
LH: loop header
LB: loop body
LE: loop exit
PB: predicated region body
PF: predicated region fallthrough
CT: control target
= control target key end

     0   :  { %19 = vsyncpa [#allocation11], 0  ;;  %s1642_s0 = inlined_call_operand.hbm [shape: f32[6], index: 0, kind: input, shape index: {}]   ;;  %s1643_s1 = inlined_call_operand.hbm [shape: f32[16,128], index: 1, kind: input, shape index: {}]   ;;  %s1644_s2 = inlined_call_operand.hbm [shape: bf16[128,128], index: 2, kind: input, shape index: {}]   ;;  %s1645_s3 = inlined_call_operand.hbm [shape: bf16[128,128], index: 3, kind: input, shape index: {}]   ;;  %s1646_s4 = inlined_call_operand.vmem [shape: f32[1,128], index: 4, kind: input, shape index: {}]   ;;  %s1647_s5 = inlined_call_operand.vmem [shape: f32[1,128], index: 5, kind: input, shape index: {}]   ;;  %s1648_s6 = inlined_call_operand.hbm [shape: bf16[128,128], index: 6, kind: input, shape index: {}]   ;;  %s1649_s7 = inlined_call_operand.hbm [shape: bf16[128,128], index: 7, kind: input, shape index: {}]   ;;  %s1650_s8 = inlined_call_operand.vmem [shape: f32[1,128], index: 8, kind: input, shape index: {}]   ;;  %s1651_s9 = inlined_call_operand.vmem [shape: f32[1,128], index: 9, kind: input, shape index: {}]   ;;  %s1652_s10 = inlined_call_operand.hbm [shape: bf16[128,128], index: 10, kind: input, shape index: {}]   ;;  %s1653_s11 = inlined_call_operand.hbm [shape: bf16[128,128], index: 11, kind: input, shape index: {}]   ;;  %s1654_s12 = inlined_call_operand.vmem [shape: f32[1,128], index: 12, kind: input, shape index: {}]   ;;  %s1655_s13 = inlined_call_operand.vmem [shape: f32[1,128], index: 13, kind: input, shape index: {}]   ;;  %s1656_s14 = inlined_call_operand.hbm [shape: f32[16,128], index: 14, kind: output, shape index: {}]  }
   0x1   :  { %20 = vsyncpa [#allocation9], 0 }
   0x2   :  { %21 = vsyncpa [#allocation14], 0 }
   0x3   :  { %22 = vsyncpa [#allocation17], 0 }
   0x4   :  { %23 = vsyncpa [#allocation20], 0 }
   0x5   :  { %24 = vsyncpa [#allocation10], 0  ;;  %s1264_s29 = smov [#allocation13]   ;;  %s1066_s17 = scalar_lea.hbm %s1644_s2, 1024 }
   0x6   :  { %s50_s30 = sshll.u32 %s1264_s29, 4  ;;  %p1067_p0 = scmp.ne.s32.totalorder %s1644_s2, %s1066_s17  ;;  %s51_s30 = int_to_ptr.vmem [resolvable:$true] %s50_s30 }
   0x7   :  { %p1070_p1 = scmp.lt.u32.totalorder %s1066_s17, %s1644_s2 }
   0x9   :  { %p1072_p2 = pnand %p1070_p1, %p1067_p0 }
   0xb   :  { %1075 = shalt.err (!%p1072_p2)
}
   0xc   :  { %s1076_s22 = scalar_lea.vmem %s51_s30, 1024  ;;  %p1081_p4 = scmp.lt.s32.totalorder %s51_s30, %s51_s30 }
   0xd   :  { %p1077_p3 = scmp.ne.s32.totalorder %s51_s30, %s1076_s22  ;;  %p1082_p5 = scmp.lt.s32.totalorder %s1076_s22, %s1076_s22 }
   0xf   :  { %p1083_p6 = por %p1082_p5, %p1081_p4 }
  0x11   :  { %p1084_p7 = pnand %p1083_p6, %p1077_p3 }
  0x13   :  { %1087 = shalt.err (!%p1084_p7)
}
  0x14   :  { %s1265_s23 = smov 64   ;;  %s1266_s24 = smov 4  }
  0x15   :  { %56 = dma.hbm_to_vmem [thread:$0]  %s1644_s2, 1024, %s51_s30, [#allocation14], %s1265_s23, %s1265_s23, %s1266_s24  }
  0x16   :  { %s1267_s27 = smov [#allocation16]   ;;  %s1268_s29 = smov [#allocation19]  }
  0x17   :  { %s78_s28 = sshll.u32 %s1267_s27, 4  ;;  %s106_s15 = sshll.u32 %s1268_s29, 4  ;;  %s79_s28 = int_to_ptr.vmem [resolvable:$true] %s78_s28  ;;  %s107_s15 = int_to_ptr.vmem [resolvable:$true] %s106_s15 }
  0x18   :  { %s1088_s18 = scalar_lea.hbm %s1648_s6, 1024 }
  0x19   :  { %p1089_p8 = scmp.ne.s32.totalorder %s1648_s6, %s1088_s18  ;;  %p1092_p9 = scmp.lt.u32.totalorder %s1088_s18, %s1648_s6 }
  0x1b   :  { %p1094_p10 = pnand %p1092_p9, %p1089_p8 }
  0x1d   :  { %1097 = shalt.err (!%p1094_p10)
}
  0x1e   :  { %s1098_s2 = scalar_lea.vmem %s79_s28, 1024  ;;  %p1103_p12 = scmp.lt.s32.totalorder %s79_s28, %s79_s28 }
  0x1f   :  { %p1099_p11 = scmp.ne.s32.totalorder %s79_s28, %s1098_s2  ;;  %p1104_p13 = scmp.lt.s32.totalorder %s1098_s2, %s1098_s2 }
  0x21   :  { %p1105_p0 = por %p1104_p13, %p1103_p12 }
  0x23   :  { %p1106_p1 = pnand %p1105_p0, %p1099_p11 }
  0x25   :  { %1109 = shalt.err (!%p1106_p1)
}
  0x26   :  { %84 = dma.hbm_to_vmem [thread:$0]  %s1648_s6, 1024, %s79_s28, [#allocation17], %s1265_s23, %s1265_s23, %s1266_s24  }
  0x27   :  { %s1110_s29 = scalar_lea.hbm %s1652_s10, 1024 }
  0x28   :  { %p1111_p2 = scmp.ne.s32.totalorder %s1652_s10, %s1110_s29  ;;  %p1114_p3 = scmp.lt.u32.totalorder %s1110_s29, %s1652_s10 }
  0x2a   :  { %p1116_p4 = pnand %p1114_p3, %p1111_p2 }
  0x2c   :  { %1119 = shalt.err (!%p1116_p4)
}
  0x2d   :  { %s1120_s20 = scalar_lea.vmem %s107_s15, 1024  ;;  %p1125_p6 = scmp.lt.s32.totalorder %s107_s15, %s107_s15 }
  0x2e   :  { %p1121_p5 = scmp.ne.s32.totalorder %s107_s15, %s1120_s20  ;;  %p1126_p7 = scmp.lt.s32.totalorder %s1120_s20, %s1120_s20 }
  0x30   :  { %p1127_p8 = por %p1126_p7, %p1125_p6 }
  0x32   :  { %p1128_p9 = pnand %p1127_p8, %p1121_p5 }
  0x34   :  { %1131 = shalt.err (!%p1128_p9)
}
  0x35   :  { %112 = dma.hbm_to_vmem [thread:$0]  %s1652_s10, 1024, %s107_s15, [#allocation20], %s1265_s23, %s1265_s23, %s1266_s24  }
  0x36   :  { %s1132_s2 = scalar_lea.hbm %s1642_s0, 16 }
  0x37   :  { %p1133_p10 = scmp.ne.s32.totalorder %s1642_s0, %s1132_s2  ;;  %p1136_p11 = scmp.lt.u32.totalorder %s1132_s2, %s1642_s0 }
  0x39   :  { %p1138_p12 = pnand %p1136_p11, %p1133_p10 }
  0x3b   :  { %1141 = shalt.err (!%p1138_p12)
}
  0x3c   :  { %s1269_s29 = smov [#allocation8]   ;;  %s1270_s10 = smov [#allocation12]  }
  0x3d   :  { %32 = dma.hbm_to_smem %s1642_s0, 16, %s1269_s29, [#allocation11]  }
  0x3e   :  { %s38_s15 = sshll.u32 %s1270_s10, 4  ;;  %s1142_s20 = scalar_lea.hbm %s1643_s1, 256  ;;  %s39_s15 = int_to_ptr.vmem [resolvable:$true] %s38_s15 }
  0x3f   :  { %p1143_p13 = scmp.ne.s32.totalorder %s1643_s1, %s1142_s20  ;;  %p1146_p0 = scmp.lt.u32.totalorder %s1142_s20, %s1643_s1 }
  0x41   :  { %p1148_p1 = pnand %p1146_p0, %p1143_p13 }
  0x43   :  { %1151 = shalt.err (!%p1148_p1)
}
  0x44   :  { %s1152_s2 = scalar_lea.vmem %s39_s15, 256  ;;  %p1157_p3 = scmp.lt.s32.totalorder %s39_s15, %s39_s15 }
  0x45   :  { %p1153_p2 = scmp.ne.s32.totalorder %s39_s15, %s1152_s2  ;;  %p1158_p4 = scmp.lt.s32.totalorder %s1152_s2, %s1152_s2 }
  0x47   :  { %p1159_p5 = por %p1158_p4, %p1157_p3 }
  0x49   :  { %p1160_p6 = pnand %p1159_p5, %p1153_p2 }
  0x4b   :  { %1163 = shalt.err (!%p1160_p6)
}
  0x4c   :  { %s1271_s0 = smov 128   ;;  %s1272_s30 = smov 8  }
  0x4d   :  { %44 = dma.hbm_to_vmem [thread:$0]  %s1643_s1, 256, %s39_s15, [#allocation9], %s1271_s0, %s1271_s0, %s1272_s30  }
  0x4e   :  { %s1273_s27 = smov [#allocation15]   ;;  %s1274_s16 = smov [#allocation18]  }
  0x4f   :  { %s62_s29 = sshll.u32 %s1273_s27, 4  ;;  %s90_s17 = sshll.u32 %s1274_s16, 4  ;;  %s63_s29 = int_to_ptr.vmem [resolvable:$true] %s62_s29  ;;  %s91_s17 = int_to_ptr.vmem [resolvable:$true] %s90_s17 }
  0x50   :  { %s1164_s19 = scalar_lea.hbm %s1645_s3, 1024 }
  0x51   :  { %p1165_p7 = scmp.ne.s32.totalorder %s1645_s3, %s1164_s19  ;;  %p1168_p8 = scmp.lt.u32.totalorder %s1164_s19, %s1645_s3 }
  0x53   :  { %p1170_p9 = pnand %p1168_p8, %p1165_p7 }
  0x55   :  { %1173 = shalt.err (!%p1170_p9)
}
  0x56   :  { %s1174_s1 = scalar_lea.vmem %s63_s29, 1024  ;;  %p1179_p11 = scmp.lt.s32.totalorder %s63_s29, %s63_s29 }
  0x57   :  { %p1175_p10 = scmp.ne.s32.totalorder %s63_s29, %s1174_s1  ;;  %p1180_p12 = scmp.lt.s32.totalorder %s1174_s1, %s1174_s1 }
  0x59   :  { %p1181_p13 = por %p1180_p12, %p1179_p11 }
  0x5b   :  { %p1182_p0 = pnand %p1181_p13, %p1175_p10 }
  0x5d   :  { %1185 = shalt.err (!%p1182_p0)
}
  0x5e   :  { %68 = dma.hbm_to_vmem [thread:$0]  %s1645_s3, 1024, %s63_s29, [#allocation14], %s1265_s23, %s1265_s23, %s1266_s24  }
  0x5f   :  { %s1186_s26 = scalar_lea.hbm %s1649_s7, 1024 }
  0x60   :  { %p1187_p1 = scmp.ne.s32.totalorder %s1649_s7, %s1186_s26  ;;  %p1190_p2 = scmp.lt.u32.totalorder %s1186_s26, %s1649_s7 }
  0x62   :  { %p1192_p3 = pnand %p1190_p2, %p1187_p1 }
  0x64   :  { %1195 = shalt.err (!%p1192_p3)
}
  0x65   :  { %s1196_s19 = scalar_lea.vmem %s91_s17, 1024  ;;  %p1201_p5 = scmp.lt.s32.totalorder %s91_s17, %s91_s17 }
  0x66   :  { %p1197_p4 = scmp.ne.s32.totalorder %s91_s17, %s1196_s19  ;;  %p1202_p6 = scmp.lt.s32.totalorder %s1196_s19, %s1196_s19 }
  0x68   :  { %p1203_p7 = por %p1202_p6, %p1201_p5 }
  0x6a   :  { %p1204_p8 = pnand %p1203_p7, %p1197_p4 }
  0x6c   :  { %1207 = shalt.err (!%p1204_p8)
}
  0x6d   :  { %96 = dma.hbm_to_vmem [thread:$0]  %s1649_s7, 1024, %s91_s17, [#allocation17], %s1265_s23, %s1265_s23, %s1266_s24  }
  0x6e   :  { %s1275_s20 = smov [#allocation21]   ;;  %s1208_s1 = scalar_lea.hbm %s1653_s11, 1024 }
  0x6f   :  { %s118_s6 = sshll.u32 %s1275_s20, 4  ;;  %p1209_p9 = scmp.ne.s32.totalorder %s1653_s11, %s1208_s1  ;;  %s119_s6 = int_to_ptr.vmem [resolvable:$true] %s118_s6 }
  0x70   :  { %p1212_p10 = scmp.lt.u32.totalorder %s1208_s1, %s1653_s11 }
  0x72   :  { %p1214_p11 = pnand %p1212_p10, %p1209_p9 }
  0x74   :  { %1217 = shalt.err (!%p1214_p11)
}
  0x75   :  { %s1218_s26 = scalar_lea.vmem %s119_s6, 1024  ;;  %p1223_p13 = scmp.lt.s32.totalorder %s119_s6, %s119_s6 }
  0x76   :  { %p1219_p12 = scmp.ne.s32.totalorder %s119_s6, %s1218_s26  ;;  %p1224_p0 = scmp.lt.s32.totalorder %s1218_s26, %s1218_s26 }
  0x78   :  { %p1225_p1 = por %p1224_p0, %p1223_p13 }
  0x7a   :  { %p1226_p2 = pnand %p1225_p1, %p1219_p12 }
  0x7c   :  { %1229 = shalt.err (!%p1226_p2)
}
  0x7d   :  { %124 = dma.hbm_to_vmem [thread:$0]  %s1653_s11, 1024, %s119_s6, [#allocation20], %s1265_s23, %s1265_s23, %s1266_s24  }
  0x7e   :  { %1252 = dma.done.wait [#allocation11], 16  }
  0x7f   :  { %1253 = vsyncadd [#allocation11], 4294967280 }
  0x80   :  { %1254 = dma.done.wait [#allocation9], 256  }
  0x81   :  { %1255 = vsyncadd [#allocation9], 4294967040 }
  0x82   :  { %1256 = dma.done.wait [#allocation14], 2048  }
  0x83   :  { %1257 = vsyncadd [#allocation14], 4294965248 }
  0x84   :  { %1258 = dma.done.wait [#allocation17], 2048  }
  0x85   :  { %1259 = vsyncadd [#allocation17], 4294965248 }
  0x86   :  { %1260 = dma.done.wait [#allocation20], 2048  }
  0x87   :  { %1261 = vsyncadd [#allocation20], 4294965248 }
  0x88   :  { %153 = sfence }
  0x89   :  { %s1471_s27 = sld [smem:[#allocation8]]  ;;  %v731_v0 = vld [vmem:[#allocation13] sm:$0xff]   ;;  %v922_v2 = vld [vmem:[#allocation13 + $0x8] sm:$0xff]   ;;  %v1276_v3 = vmov 0.0   ;;  %v923_v7 = vld [vmem:[#allocation13 + $0x10] sm:$0xff]   ;;  %s1492_s11 = sld [smem:[#allocation8 + $0x2]] }
  0x8a   :  { %v763_v1 = vld [vmem:[#allocation15] sm:$0xff]   ;;  %991 = vmatprep.subr.bf16.mxu0 %v1276_v3  ;;  %v732_v4 = vunpack.c.l.bf16 %v731_v0  ;;  %v733_v5 = vunpack.c.h.bf16 %v731_v0  ;;  %v929_v6 = vld [vmem:[#allocation15 + $0x8] sm:$0xff]   ;;  %v930_v8 = vld [vmem:[#allocation15 + $0x10] sm:$0xff]   ;;  %1011 = vmatprep.subr.bf16.mxu1 %v1276_v3  ;;  %v736_v11 = vunpack.c.l.bf16 %v922_v2  ;;  %v737_v12 = vunpack.c.h.bf16 %v922_v2  ;;  %s1540_s23 = sld [smem:[#allocation8 + $0x1]] }
  0x8b   :  { %v764_v9 = vunpack.c.l.bf16 %v763_v1  ;;  %v765_v10 = vunpack.c.h.bf16 %v763_v1  ;;  %v924_v13 = vld [vmem:[#allocation13 + $0x18] sm:$0xff]   ;;  %v925_v15 = vld [vmem:[#allocation13 + $0x20] sm:$0xff]   ;;  %v768_v16 = vunpack.c.l.bf16 %v929_v6  ;;  %v769_v17 = vunpack.c.h.bf16 %v929_v6  ;;  %v933_v21 = vld [vmem:[#allocation15 + $0x28] sm:$0xff]  }
  0x8c   :  { %v931_v14 = vld [vmem:[#allocation15 + $0x18] sm:$0xff]   ;;  %v740_v18 = vunpack.c.l.bf16 %v923_v7  ;;  %v741_v19 = vunpack.c.h.bf16 %v923_v7  ;;  %v932_v20 = vld [vmem:[#allocation15 + $0x20] sm:$0xff]   ;;  %v772_v22 = vunpack.c.l.bf16 %v930_v8  ;;  %v773_v23 = vunpack.c.h.bf16 %v930_v8  ;;  %v926_v46 = vld [vmem:[#allocation13 + $0x28] sm:$0xff]  }
  0x8d   :  { %v776_v24 = vunpack.c.l.bf16 %v931_v14  ;;  %v777_v25 = vunpack.c.h.bf16 %v931_v14  ;;  %v744_v26 = vunpack.c.l.bf16 %v924_v13  ;;  %v745_v27 = vunpack.c.h.bf16 %v924_v13  ;;  %v934_v52 = vld [vmem:[#allocation15 + $0x30] sm:$0xff]   ;;  %v1501_v62 = vld [vmem:[#allocation15 + $0x38] sm:$0xff]  }
  0x8e   :  { %v748_v28 = vunpack.c.l.bf16 %v925_v15  ;;  %v749_v29 = vunpack.c.h.bf16 %v925_v15  ;;  %v780_v31 = vunpack.c.l.bf16 %v932_v20  ;;  %v781_v32 = vunpack.c.h.bf16 %v932_v20  ;;  %v1499_v61 = vld [vmem:[#allocation13 + $0x30] sm:$0xff]  }
  0x8f   :  { %v1476_v30 = vstv %s1471_s27  ;;  %v784_v33 = vunpack.c.l.bf16 %v933_v21  ;;  %v752_v55 = vunpack.c.l.bf16 %v926_v46  ;;  %v785_v56 = vunpack.c.h.bf16 %v933_v21 }
  0x90   :  { %v226_v34 = vmul.f32 %v764_v9, %v1476_v30  ;;  %v227_v35 = vmul.f32 %v765_v10, %v1476_v30  ;;  %v228_v36 = vmul.f32 %v768_v16, %v1476_v30  ;;  %v229_v37 = vmul.f32 %v769_v17, %v1476_v30  ;;  %v795_v9 = vld [vmem:[#allocation16] sm:$0xff]  }
  0x91   :  { %v230_v38 = vmul.f32 %v772_v22, %v1476_v30  ;;  %v231_v39 = vmul.f32 %v773_v23, %v1476_v30  ;;  %v232_v40 = vmul.f32 %v776_v24, %v1476_v30  ;;  %v233_v41 = vmul.f32 %v777_v25, %v1476_v30  ;;  %v827_v10 = vld [vmem:[#allocation18] sm:$0xff]   ;;  %v937_v24 = vld [vmem:[#allocation16 + $0x10] sm:$0xff]  }
  0x92   :  { %v242_v42 = vadd.f32 %v732_v4, %v226_v34  ;;  %v243_v43 = vadd.f32 %v733_v5, %v227_v35  ;;  %v244_v44 = vadd.f32 %v736_v11, %v228_v36  ;;  %v245_v45 = vadd.f32 %v737_v12, %v229_v37  ;;  %v1505_v4 = vld [vmem:[#allocation13 + $0x38] sm:$0xff]  }
  0x93   :  { %v246_v47 = vadd.f32 %v740_v18, %v230_v38  ;;  %v247_v49 = vadd.f32 %v741_v19, %v231_v39  ;;  %v234_v50 = vmul.f32 %v780_v31, %v1476_v30  ;;  %v235_v51 = vmul.f32 %v781_v32, %v1476_v30  ;;  %v936_v18 = vld [vmem:[#allocation16 + $0x8] sm:$0xff]   ;;  %v938_v35 = vld [vmem:[#allocation16 + $0x18] sm:$0xff]  }
  0x94   :  { %v258_v48 = vpack.c.bf16 %v243_v43, %v242_v42  ;;  %v1488_v53 = vadd.f32 %v744_v26, %v232_v40  ;;  %v1490_v54 = vadd.f32 %v745_v27, %v233_v41  ;;  %v259_v57 = vpack.c.bf16 %v245_v45, %v244_v44  ;;  %v943_v19 = vld [vmem:[#allocation18 + $0x8] sm:$0xff]   ;;  %v945_v40 = vld [vmem:[#allocation18 + $0x18] sm:$0xff]  }
  0x95   :  { %v1494_v58 = vadd.f32 %v748_v28, %v234_v50  ;;  %v1496_v59 = vadd.f32 %v749_v29, %v235_v51  ;;  %v236_v60 = vmul.f32 %v784_v33, %v1476_v30  ;;  %v753_v63 = vunpack.c.h.bf16 %v926_v46  ;;  %v944_v29 = vld [vmem:[#allocation18 + $0x10] sm:$0xff]  }
  0x96   :  { %992 = vmatpush3.bf16.msra.mxu0 %v258_v48  ;;  %v237_v0 = vmul.f32 %v785_v56, %v1476_v30  ;;  %v788_v1 = vunpack.c.l.bf16 %v934_v52  ;;  %v260_v2 = vpack.c.bf16 %v247_v49, %v246_v47  ;;  %v261_v5 = vpack.c.bf16 %v1490_v54, %v1488_v53  ;;  %v946_v49 = vld [vmem:[#allocation18 + $0x20] sm:$0xff]  }
  0x97   :  { %993 = vmatprep.subr.bf16.mxu0 %v1276_v3  ;;  %v756_v6 = vunpack.c.l.bf16 %v1499_v61  ;;  %v789_v7 = vunpack.c.h.bf16 %v934_v52  ;;  %v792_v8 = vunpack.c.l.bf16 %v1501_v62  ;;  %v262_v11 = vpack.c.bf16 %v1496_v59, %v1494_v58 }
  0x98   :  { %v1513_v12 = vadd.f32 %v752_v55, %v236_v60  ;;  %v757_v13 = vunpack.c.h.bf16 %v1499_v61  ;;  %v1517_v14 = vadd.f32 %v753_v63, %v237_v0  ;;  %v238_v15 = vmul.f32 %v788_v1, %v1476_v30  ;;  %v939_v60 = vld [vmem:[#allocation16 + $0x20] sm:$0xff]   ;;  %v940_v61 = vld [vmem:[#allocation16 + $0x28] sm:$0xff]  }
  0x99   :  { %v760_v16 = vunpack.c.l.bf16 %v1505_v4  ;;  %v761_v17 = vunpack.c.h.bf16 %v1505_v4  ;;  %vm1277_vm0 = vmmov 0   ;;  %v796_v20 = vunpack.c.l.bf16 %v795_v9  ;;  %v522_v4 = vld [vmem:[#allocation12] sm:$0xff] }
  0x9a   :  { %994 = vmatpush3.bf16.msra.mxu0 %v259_v57  ;;  %1007 = vmatprep.mubr.msk.bf16.mxu0 %vm1277_vm0, %v1276_v3  ;;  %v797_v21 = vunpack.c.h.bf16 %v795_v9  ;;  %v828_v22 = vunpack.c.l.bf16 %v827_v10  ;;  %v829_v23 = vunpack.c.h.bf16 %v827_v10  ;;  %v239_v25 = vmul.f32 %v789_v7, %v1476_v30  ;;  %v947_v9 = vld [vmem:[#allocation18 + $0x28] sm:$0xff]  }
  0x9b   :  { %995 = vmatprep.subr.bf16.mxu0 %v1276_v3  ;;  %1027 = vmatprep.mubr.msk.bf16.mxu1 %vm1277_vm0, %v1276_v3  ;;  %v793_v26 = vunpack.c.h.bf16 %v1501_v62  ;;  %v1529_v27 = vmul.f32 %v792_v8, %v1476_v30  ;;  %v1532_v28 = vstv %s1492_s11  ;;  %v800_v33 = vunpack.c.l.bf16 %v936_v18 }
  0x9c   :  { %v347_v31 = vmul.f32 %v828_v22, %v1532_v28  ;;  %v348_v32 = vmul.f32 %v829_v23, %v1532_v28  ;;  %v832_v34 = vunpack.c.l.bf16 %v943_v19  ;;  %v263_v36 = vpack.c.bf16 %v1517_v14, %v1513_v12 }
  0x9d   :  { %v801_v37 = vunpack.c.h.bf16 %v936_v18  ;;  %v833_v38 = vunpack.c.h.bf16 %v943_v19  ;;  %v804_v39 = vunpack.c.l.bf16 %v937_v24  ;;  %v836_v44 = vunpack.c.l.bf16 %v944_v29 }
  0x9e   :  { %996 = vmatpush3.bf16.msra.mxu0 %v260_v2  ;;  %v363_v41 = vadd.f32 %v796_v20, %v347_v31  ;;  %v364_v42 = vadd.f32 %v797_v21, %v348_v32  ;;  %v349_v43 = vmul.f32 %v832_v34, %v1532_v28  ;;  %v805_v46 = vunpack.c.h.bf16 %v937_v24 }
  0x9f   :  { %997 = vmatprep.subr.bf16.mxu0 %v1276_v3  ;;  %v350_v45 = vmul.f32 %v833_v38, %v1532_v28  ;;  %v837_v47 = vunpack.c.h.bf16 %v944_v29  ;;  %v808_v48 = vunpack.c.l.bf16 %v938_v35  ;;  %v351_v52 = vmul.f32 %v836_v44, %v1532_v28  ;;  %v941_v44 = vld [vmem:[#allocation16 + $0x30] sm:$0xff]  }
  0xa0   :  { %v379_v50 = vpack.c.bf16 %v364_v42, %v363_v41  ;;  %v365_v51 = vadd.f32 %v800_v33, %v349_v43  ;;  %v840_v53 = vunpack.c.l.bf16 %v945_v40  ;;  %v809_v56 = vunpack.c.h.bf16 %v938_v35  ;;  %v948_v41 = vld [vmem:[#allocation18 + $0x30] sm:$0xff]  }
  0xa1   :  { %v366_v54 = vadd.f32 %v801_v37, %v350_v45  ;;  %v352_v55 = vmul.f32 %v837_v47, %v1532_v28  ;;  %v841_v57 = vunpack.c.h.bf16 %v945_v40  ;;  %v254_v62 = vadd.f32 %v756_v6, %v238_v15  ;;  %v275_v15 = vld [vmem:[%s1647_s5] sm:$0x1]  ;;  %s1587_s5 = sld [smem:[#allocation8 + $0x3]] }
  0xa2   :  { %998 = vmatpush3.bf16.msra.mxu0 %v261_v5  ;;  %1012 = vmatpush3.bf16.msra.mxu1 %v379_v50  ;;  %v367_v63 = vadd.f32 %v804_v39, %v351_v52  ;;  %v353_v0 = vmul.f32 %v840_v53, %v1532_v28  ;;  %v844_v1 = vunpack.c.l.bf16 %v946_v49  ;;  %v845_v8 = vunpack.c.h.bf16 %v946_v49  ;;  %v949_v49 = vld [vmem:[#allocation18 + $0x38] sm:$0xff]  }
  0xa3   :  { %999 = vmatprep.subr.bf16.mxu0 %v1276_v3  ;;  %1013 = vmatprep.subr.bf16.mxu1 %v1276_v3  ;;  %v380_v2 = vpack.c.bf16 %v366_v54, %v365_v51  ;;  %v368_v5 = vadd.f32 %v805_v46, %v352_v55  ;;  %v354_v7 = vmul.f32 %v841_v57, %v1532_v28  ;;  %v812_v12 = vunpack.c.l.bf16 %v939_v60  ;;  %v942_v54 = vld [vmem:[#allocation16 + $0x38] sm:$0xff]  }
  0xa4   :  { %v255_v6 = vadd.f32 %v757_v13, %v239_v25  ;;  %v241_v10 = vmul.f32 %v793_v26, %v1476_v30  ;;  %v813_v14 = vunpack.c.h.bf16 %v939_v60  ;;  %v369_v19 = vadd.f32 %v808_v48, %v353_v0  ;;  %v274_v30 = vld [vmem:[%s1646_s4] sm:$0x1]  ;;  %s725_s4 = sld [smem:[#allocation8 + $0x4]] }
  0xa5   :  { %v381_v18 = vpack.c.bf16 %v368_v5, %v367_v63  ;;  %v370_v20 = vadd.f32 %v809_v56, %v354_v7  ;;  %v355_v58 = vmul.f32 %v844_v1, %v1532_v28  ;;  %v356_v59 = vmul.f32 %v845_v8, %v1532_v28  ;;  %v957_v5 = vld [vmem:[#allocation21 + $0x8] sm:$0xff]   ;;  %v958_v7 = vld [vmem:[#allocation21 + $0x10] sm:$0xff]   ;;  %v859_v8 = vld [vmem:[#allocation19] sm:$0xff]  }
  0xa6   :  { %1000 = vmatpush3.bf16.msra.mxu0 %v262_v11  ;;  %1014 = vmatpush3.bf16.msra.mxu1 %v380_v2  ;;  %v848_v11 = vunpack.c.l.bf16 %v947_v9  ;;  %v849_v13 = vunpack.c.h.bf16 %v947_v9  ;;  %v276_v21 = vstv %s1540_s23  ;;  %v264_v23 = vpack.c.bf16 %v255_v6, %v254_v62  ;;  %v891_v2 = vld [vmem:[#allocation21] sm:$0xff]   ;;  %v950_v9 = vld [vmem:[#allocation19 + $0x8] sm:$0xff]  }
  0xa7   :  { %1001 = vmatprep.subr.bf16.mxu0 %v1276_v3  ;;  %1015 = vmatprep.subr.bf16.mxu1 %v1276_v3  ;;  %v277_v22 = vmul.f32 %v276_v21, %v275_v15  ;;  %v256_v24 = vadd.f32 %v760_v16, %v1529_v27  ;;  %v257_v25 = vadd.f32 %v761_v17, %v241_v10  ;;  %v816_v29 = vunpack.c.l.bf16 %v940_v61  ;;  %v523_v17 = vld [vmem:[#allocation12 + $0x8] sm:$0xff]  ;;  %v951_v15 = vld [vmem:[#allocation19 + $0x10] sm:$0xff]  }
  0xa8   :  { %v371_v26 = vadd.f32 %v812_v12, %v355_v58  ;;  %v817_v31 = vunpack.c.h.bf16 %v940_v61  ;;  %v382_v33 = vpack.c.bf16 %v370_v20, %v369_v19  ;;  %v372_v34 = vadd.f32 %v813_v14, %v356_v59  ;;  %v959_v61 = vld [vmem:[#allocation21 + $0x18] sm:$0xff]  }
  0xa9   :  { %v278_v32 = vadd.f32 %v277_v22, %v274_v30  ;;  %v357_v35 = vmul.f32 %v848_v11, %v1532_v28  ;;  %v265_v16 = vpack.c.bf16 %v257_v25, %v256_v24  ;;  %v524_v39 = vpack.c.bf16 %v523_v17, %v522_v4 }
  0xaa   :  { %1002 = vmatpush3.bf16.msra.mxu0 %v263_v36  ;;  %1016 = vmatpush3.bf16.msra.mxu1 %v381_v18  ;;  %v358_v36 = vmul.f32 %v849_v13, %v1532_v28  ;;  %v383_v27 = vpack.c.bf16 %v372_v34, %v371_v26  ;;  %v852_v42 = vunpack.c.l.bf16 %v948_v41  ;;  %v853_v43 = vunpack.c.h.bf16 %v948_v41 }
  0xab   :  { %1003 = vmatprep.subr.bf16.mxu0 %v1276_v3  ;;  %1017 = vmatprep.subr.bf16.mxu1 %v1276_v3  ;;  %279 = vst [vmem:[#allocation3] sm:$0x1] %v278_v32  ;;  %v373_v37 = vadd.f32 %v816_v29, %v357_v35  ;;  %v820_v45 = vunpack.c.l.bf16 %v941_v44  ;;  %v821_v46 = vunpack.c.h.bf16 %v941_v44  ;;  %v856_v52 = vunpack.c.l.bf16 %v949_v49  ;;  %v952_v29 = vld [vmem:[#allocation19 + $0x18] sm:$0xff]  }
  0xac   :  { %v374_v38 = vadd.f32 %v817_v31, %v358_v36  ;;  %v359_v47 = vmul.f32 %v852_v42, %v1532_v28  ;;  %v360_v48 = vmul.f32 %v853_v43, %v1532_v28  ;;  %v857_v53 = vunpack.c.h.bf16 %v949_v49 }
  0xad   :  { %v824_v56 = vunpack.c.l.bf16 %v942_v54  ;;  %v825_v57 = vunpack.c.h.bf16 %v942_v54  ;;  %v361_v60 = vmul.f32 %v856_v52, %v1532_v28  ;;  %v892_v6 = vunpack.c.l.bf16 %v891_v2 }
  0xae   :  { %1004 = vmatpush3.bf16.msra.mxu0 %v264_v23  ;;  %1018 = vmatpush3.bf16.msra.mxu1 %v382_v33  ;;  %v384_v40 = vpack.c.bf16 %v374_v38, %v373_v37  ;;  %v375_v50 = vadd.f32 %v820_v45, %v359_v47  ;;  %v376_v51 = vadd.f32 %v821_v46, %v360_v48  ;;  %v893_v10 = vunpack.c.h.bf16 %v891_v2  ;;  %v396_v37 = vld [vmem:[%s1651_s9] sm:$0x1] }
  0xaf   :  { %1005 = vmatprep.subr.bf16.mxu0 %v1276_v3  ;;  %1019 = vmatprep.subr.bf16.mxu1 %v1276_v3  ;;  %v362_v62 = vmul.f32 %v857_v53, %v1532_v28  ;;  %v377_v63 = vadd.f32 %v824_v56, %v361_v60  ;;  %v896_v12 = vunpack.c.l.bf16 %v957_v5  ;;  %v897_v14 = vunpack.c.h.bf16 %v957_v5  ;;  %v961_v46 = vld [vmem:[#allocation21 + $0x28] sm:$0xff]  }
  0xb0   :  { %v385_v55 = vpack.c.bf16 %v376_v51, %v375_v50  ;;  %v900_v18 = vunpack.c.l.bf16 %v958_v7  ;;  %v901_v28 = vunpack.c.h.bf16 %v958_v7  ;;  %v860_v19 = vunpack.c.l.bf16 %v859_v8  ;;  %v395_v47 = vld [vmem:[%s1650_s8] sm:$0x1]  ;;  %s726_s8 = sld [smem:[#allocation8 + $0x5]] }
  0xb1   :  { %v378_v0 = vadd.f32 %v825_v57, %v362_v62  ;;  %v861_v20 = vunpack.c.h.bf16 %v859_v8  ;;  %v864_v58 = vunpack.c.l.bf16 %v950_v9  ;;  %v865_v59 = vunpack.c.h.bf16 %v950_v9  ;;  %v954_v62 = vld [vmem:[#allocation19 + $0x28] sm:$0xff]  }
  0xb2   :  { %1006 = vmatpush3.bf16.msra.mxu0 %v265_v16  ;;  %1020 = vmatpush3.bf16.msra.mxu1 %v383_v27  ;;  %v1589_v11 = vstv %s725_s4  ;;  %v868_v13 = vunpack.c.l.bf16 %v951_v15  ;;  %v869_v30 = vunpack.c.h.bf16 %v951_v15  ;;  %v904_v31 = vunpack.c.l.bf16 %v959_v61  ;;  %v960_v16 = vld [vmem:[#allocation21 + $0x20] sm:$0xff]   ;;  %v727_v15 = vld [vmem:[#allocation3] ss:$0 sm:$0xff] }
  0xb3   :  { %1031 = vmatprep.subr.bf16.mxu0 %v1276_v3  ;;  %1021 = vmatprep.subr.bf16.mxu1 %v1276_v3  ;;  %v386_v1 = vpack.c.bf16 %v378_v0, %v377_v63  ;;  %v468_v21 = vmul.f32 %v892_v6, %v1589_v11  ;;  %v469_v22 = vmul.f32 %v893_v10, %v1589_v11  ;;  %v905_v32 = vunpack.c.h.bf16 %v959_v61 }
  0xb4   :  { %v470_v23 = vmul.f32 %v896_v12, %v1589_v11  ;;  %v471_v24 = vmul.f32 %v897_v14, %v1589_v11  ;;  %v472_v25 = vmul.f32 %v900_v18, %v1589_v11  ;;  %v473_v26 = vmul.f32 %v901_v28, %v1589_v11 }
  0xb5   :  { %1008 = vmatmul.mubr.bf16.vlgmr.msra.gmra.mrb[0].mxu0 %v524_v39  ;;  %v484_v33 = vadd.f32 %v860_v19, %v468_v21  ;;  %v485_v34 = vadd.f32 %v861_v20, %v469_v22  ;;  %v872_v17 = vunpack.c.l.bf16 %v952_v29  ;;  %v873_v27 = vunpack.c.h.bf16 %v952_v29  ;;  %v962_v21 = vld [vmem:[#allocation21 + $0x30] sm:$0xff]  }
  0xb6   :  { %1047 = vmatprep.mubr.msk.bf16.mxu0 %vm1277_vm0, %v1276_v3  ;;  %1022 = vmatpush3.bf16.msra.mxu1 %v384_v40  ;;  %v486_v35 = vadd.f32 %v864_v58, %v470_v23  ;;  %v487_v36 = vadd.f32 %v865_v59, %v471_v24  ;;  %v474_v38 = vmul.f32 %v904_v31, %v1589_v11  ;;  %v953_v40 = vld [vmem:[#allocation19 + $0x20] sm:$0xff]   ;;  %v908_v41 = vunpack.c.l.bf16 %v960_v16  ;;  %v955_v24 = vld [vmem:[#allocation19 + $0x30] sm:$0xff]  }
  0xb7   :  { %1023 = vmatprep.subr.bf16.mxu1 %v1276_v3  ;;  %v500_v4 = vpack.c.bf16 %v485_v34, %v484_v33  ;;  %v475_v39 = vmul.f32 %v905_v32, %v1589_v11  ;;  %v909_v42 = vunpack.c.h.bf16 %v960_v16  ;;  %v488_v44 = vadd.f32 %v868_v13, %v472_v25  ;;  %v963_v32 = vld [vmem:[#allocation21 + $0x38] sm:$0xff]  }
  0xb8   :  { %v501_v43 = vpack.c.bf16 %v487_v36, %v486_v35  ;;  %v489_v45 = vadd.f32 %v869_v30, %v473_v26  ;;  %v397_v48 = vstv %s1587_s5  ;;  %v876_v50 = vunpack.c.l.bf16 %v953_v40  ;;  %v956_v16 = vld [vmem:[#allocation19 + $0x38] sm:$0xff]  }
  0xb9   :  { %1032 = vmatpush3.bf16.msra.mxu0 %v500_v4  ;;  %v398_v49 = vmul.f32 %v397_v48, %v396_v37  ;;  %v877_v51 = vunpack.c.h.bf16 %v953_v40  ;;  %v490_v52 = vadd.f32 %v872_v17, %v474_v38  ;;  %v491_v53 = vadd.f32 %v873_v27, %v475_v39 }
  0xba   :  { %1024 = vmatpush3.bf16.msra.mxu1 %v385_v55  ;;  %1033 = vmatprep.subr.bf16.mxu0 %v1276_v3  ;;  %v912_v54 = vunpack.c.l.bf16 %v961_v46  ;;  %v502_v56 = vpack.c.bf16 %v489_v45, %v488_v44  ;;  %v476_v57 = vmul.f32 %v908_v41, %v1589_v11  ;;  %v477_v60 = vmul.f32 %v909_v42, %v1589_v11  ;;  %v517_v42 = vld [vmem:[%s1655_s13] sm:$0x1]  ;;  %s1278_s13 = smov [#allocation22]  }
  0xbb   :  { %1025 = vmatprep.subr.bf16.mxu1 %v1276_v3  ;;  %v399_v55 = vadd.f32 %v398_v49, %v395_v47  ;;  %v913_v63 = vunpack.c.h.bf16 %v961_v46  ;;  %v503_v0 = vpack.c.bf16 %v491_v53, %v490_v52  ;;  %v881_v2 = vunpack.c.h.bf16 %v954_v62  ;;  %s706_s1 = sshll.u32 %s1278_s13, 4  ;;  %s707_s1 = int_to_ptr.vmem [resolvable:$true] %s706_s1 }
  0xbc   :  { %v492_v5 = vadd.f32 %v876_v50, %v476_v57  ;;  %v493_v7 = vadd.f32 %v877_v51, %v477_v60  ;;  %v478_v8 = vmul.f32 %v912_v54, %v1589_v11  ;;  %v916_v22 = vunpack.c.l.bf16 %v962_v21  ;;  %p1235_p4 = scmp.lt.s32.totalorder %s707_s1, %s707_s1 }
  0xbd   :  { %1034 = vmatpush3.bf16.msra.mxu0 %v501_v43  ;;  %400 = vst [vmem:[#allocation5] sm:$0x1] %v399_v55  ;;  %v479_v9 = vmul.f32 %v913_v63, %v1589_v11  ;;  %v917_v23 = vunpack.c.h.bf16 %v962_v21  ;;  %v884_v25 = vunpack.c.l.bf16 %v955_v24  ;;  %v885_v26 = vunpack.c.h.bf16 %v955_v24  ;;  %v516_v43 = vld [vmem:[%s1654_s12] sm:$0x1]  ;;  %s1230_s12 = scalar_lea.vmem %s707_s1, 256 }
  0xbe   :  { %1026 = vmatpush3.bf16.msra.mxu1 %v386_v1  ;;  %1035 = vmatprep.subr.bf16.mxu0 %v1276_v3  ;;  %v880_v1 = vunpack.c.l.bf16 %v954_v62  ;;  %v504_v6 = vpack.c.bf16 %v493_v7, %v492_v5  ;;  %v480_v29 = vmul.f32 %v916_v22, %v1589_v11  ;;  %v920_v35 = vunpack.c.l.bf16 %v963_v32  ;;  %p1231_p3 = scmp.ne.s32.totalorder %s707_s1, %s1230_s12  ;;  %p1236_p5 = scmp.lt.s32.totalorder %s1230_s12, %s1230_s12 }
  0xbf   :  { %v495_v12 = vadd.f32 %v881_v2, %v479_v9  ;;  %v481_v31 = vmul.f32 %v917_v23, %v1589_v11  ;;  %v921_v36 = vunpack.c.h.bf16 %v963_v32  ;;  %v888_v17 = vunpack.c.l.bf16 %v956_v16 }
  0xc0   :  { %v494_v10 = vadd.f32 %v880_v1, %v478_v8  ;;  %v496_v33 = vadd.f32 %v884_v25, %v480_v29  ;;  %v889_v27 = vunpack.c.h.bf16 %v956_v16  ;;  %v482_v37 = vmul.f32 %v920_v35, %v1589_v11  ;;  %p1237_p6 = por %p1236_p5, %p1235_p4 }
  0xc1   :  { %1036 = vmatpush3.bf16.msra.mxu0 %v502_v56  ;;  %v497_v34 = vadd.f32 %v885_v26, %v481_v31  ;;  %v483_v38 = vmul.f32 %v921_v36, %v1589_v11  ;;  %v518_v44 = vstv %s726_s8 }
  0xc2   :  { %1037 = vmatprep.subr.bf16.mxu0 %v1276_v3  ;;  %v505_v14 = vpack.c.bf16 %v495_v12, %v494_v10  ;;  %v498_v39 = vadd.f32 %v888_v17, %v482_v37  ;;  %v519_v45 = vmul.f32 %v518_v44, %v517_v42  ;;  %p1238_p7 = pnand %p1237_p6, %p1231_p3 }
  0xc3   :  { %v506_v4 = vpack.c.bf16 %v497_v34, %v496_v33  ;;  %v499_v40 = vadd.f32 %v889_v27, %v483_v38 }
  0xc4   :  { %v520_v46 = vadd.f32 %v519_v45, %v516_v43  ;;  %v728_v11 = vld [vmem:[#allocation5] ss:$0 sm:$0xff] }
  0xc5   :  { %1038 = vmatpush3.bf16.msra.mxu0 %v503_v0  ;;  %v507_v41 = vpack.c.bf16 %v499_v40, %v498_v39 }
  0xc6   :  { %1039 = vmatprep.subr.bf16.mxu0 %v1276_v3  ;;  %521 = vst [vmem:[#allocation7] sm:$0x1] %v520_v46 }
  0xc9   :  { %1040 = vmatpush3.bf16.msra.mxu0 %v504_v6 }
  0xca   :  { %1041 = vmatprep.subr.bf16.mxu0 %v1276_v3 }
  0xcd   :  { %1042 = vmatpush3.bf16.msra.mxu0 %v505_v14  ;;  %v729_v55 = vld [vmem:[#allocation7] ss:$0 sm:$0xff] }
  0xce   :  { %1043 = vmatprep.subr.bf16.mxu0 %v1276_v3 }
  0xd1   :  { %1044 = vmatpush3.bf16.msra.mxu0 %v506_v4 }
  0xd2   :  { %1045 = vmatprep.subr.bf16.mxu0 %v1276_v3 }
  0xd5   :  { %1046 = vmatpush3.bf16.msra.mxu0 %v507_v41 }
 0x188   :  { %v574_v18 = vpop.f32.mrb[0].mxu0 }
 0x189   :  { %v575_v28 = vadd.f32 %v727_v15, %v574_v18  ;;  %v1009_v19 = vpop.f32.mrb[1].mxu0 }
 0x18a   :  { %v577_v20 = vpop.f32.mrb[2].mxu0 }
 0x18b   :  { %v578_v58 = vadd.f32 %v727_v15, %v577_v20  ;;  %v1010_v59 = vpop.f32.mrb[3].mxu0  ;;  %v581_v61 = vmax.f32 %v575_v28, 0.0 }
 0x18d   :  { %v582_v13 = vmax.f32 %v578_v58, 0.0 }
 0x18f   :  { %v583_v30 = vpack.c.bf16 %v582_v13, %v581_v61 }
 0x191   :  { %1028 = vmatmul.mubr.bf16.vlgmr.msra.gmra.mrb[0].mxu1 %v583_v30 }
 0x264   :  { %v633_v47 = vpop.f32.mrb[0].mxu1 }
 0x265   :  { %v634_v48 = vadd.f32 %v728_v11, %v633_v47  ;;  %v1029_v3 = vpop.f32.mrb[1].mxu1 }
 0x266   :  { %v636_v49 = vpop.f32.mrb[2].mxu1 }
 0x267   :  { %v637_v50 = vadd.f32 %v728_v11, %v636_v49  ;;  %v1030_v51 = vpop.f32.mrb[3].mxu1  ;;  %v640_v52 = vmax.f32 %v634_v48, 0.0 }
 0x269   :  { %v641_v53 = vmax.f32 %v637_v50, 0.0 }
 0x26b   :  { %v642_v54 = vpack.c.bf16 %v641_v53, %v640_v52 }
 0x26d   :  { %1048 = vmatmul.mubr.bf16.vlgmr.msra.gmra.mrb[4].mxu0 %v642_v54 }
 0x340   :  { %v692_v56 = vpop.f32.mrb[4].mxu0 }
 0x341   :  { %v693_v57 = vadd.f32 %v729_v55, %v692_v56  ;;  %v1049_v60 = vpop.f32.mrb[5].mxu0 }
 0x342   :  { %v695_v62 = vpop.f32.mrb[6].mxu0 }
 0x343   :  { %699 = vst [vmem:[#allocation22] sm:$0xff] %v693_v57  ;;  %v696_v63 = vadd.f32 %v729_v55, %v695_v62  ;;  %v1050_v0 = vpop.f32.mrb[7].mxu0 }
 0x345   :  { %700 = vst [vmem:[#allocation22 + $0x8] sm:$0xff] %v696_v63 }
 0x346   :  { %1241 = shalt.err (!%p1238_p7)
}
 0x347   :  { %s1242_s2 = scalar_lea.hbm %s1656_s14, 256 }
 0x348   :  { %p1243_p8 = scmp.ne.s32.totalorder %s1656_s14, %s1242_s2  ;;  %p1246_p9 = scmp.lt.u32.totalorder %s1242_s2, %s1656_s14 }
 0x34a   :  { %p1248_p10 = pnand %p1246_p9, %p1243_p8 }
 0x34c   :  { %1251 = shalt.err (!%p1248_p10)
}
 0x34d   :  { %712 = dma.vmem_to_hbm [thread:$0]  %s707_s1, 256, %s1656_s14, [#allocation10], %s1271_s0, %s1271_s0, %s1272_s30  }
 0x34e   :  { %1262 = dma.done.wait [#allocation10], 256  }
 0x34f   :  { %1263 = vsyncadd [#allocation10], 4294967040 }
 0x350   :  { %716 = vsyncpa [#allocation9], 1 }
 0x351   :  { %717 = vsyncpa [#allocation14], 1 }
 0x352   :  { %718 = vsyncpa [#allocation17], 1 }
 0x353   :  { %719 = vsyncpa [#allocation20], 1 }
 0x354   :  { %720 = vsyncpa [#allocation10], 1 }
 0x355   :  { %721 = vsyncpa [#allocation11], 1 }

</bundles_post_ra>
